<compile_context>
chip_gen: v7x
topology: tpu7x:2x2x1
jax: 0.10.0
libtpu: 0.0.40
codegen_flags: <defaults>
</compile_context>

<pallas_src>
import jax
import jax.numpy as jnp
from jax.experimental import pallas as pl
from jax.experimental.pallas import tpu as pltpu

MARGIN = 0.3
BIG = 9999999.0


def _round_up(x, k):
    return ((x + k - 1) // k) * k


def cross_triplet_loss(anchor, pos, neg, label1, label2, label3,
                       *, margin=MARGIN, tm=128, tn=256):
    """CrossTripletLoss.forward(anchor, pos, neg, label1, label2, label3)."""
    # TODO(synk): the with_index=True path (p_ind / n_ind argmax/argmin
    # indices) is not implemented; only the default loss return is translated.
    m, dim = anchor.shape
    n, dim2 = pos.shape
    assert dim2 == dim and neg.shape == pos.shape

    # Tile sizes: tm multiple of 8 (sublane), tn multiple of 128 (lane).
    tm = _round_up(max(8, min(tm, _round_up(m, 8))), 8)
    tn = _round_up(max(128, min(tn, _round_up(n, 128))), 128)
    dpad = _round_up(dim, 128)
    m_pad = _round_up(m, tm)
    n_pad = _round_up(n, tn)
    n_tiles = n_pad // tn

    f32 = jnp.float32
    a = jnp.pad(anchor.astype(f32), ((0, m_pad - m), (0, dpad - dim)))
    p = jnp.pad(pos.astype(f32), ((0, n_pad - n), (0, dpad - dim)))
    ng = jnp.pad(neg.astype(f32), ((0, n_pad - n), (0, dpad - dim)))

    # Interleave pos/neg per n-tile so one BlockSpec block of 2*tn rows holds
    # [pos tile j ; neg tile j]  ->  one fused MXU matmul per grid step.
    rhs = jnp.concatenate(
        [p.reshape(n_tiles, tn, dpad), ng.reshape(n_tiles, tn, dpad)],
        axis=1).reshape(2 * n_pad, dpad)

    # Precompute squared norms (zero padding preserves them).
    a2 = jnp.sum(a * a, axis=1, keepdims=True)              # (m_pad, 1)
    r2 = jnp.stack([jnp.sum(p * p, axis=1),
                    jnp.sum(ng * ng, axis=1)], axis=0)[:, None, :]  # (2,1,n_pad)

    l1 = jnp.pad(label1.astype(jnp.int32), (0, m_pad - m)).reshape(m_pad, 1)
    l23 = jnp.stack([jnp.pad(label2.astype(jnp.int32), (0, n_pad - n)),
                     jnp.pad(label3.astype(jnp.int32), (0, n_pad - n))],
                    axis=0)[:, None, :]                      # (2, 1, n_pad)

    grid = (m_pad // tm, n_tiles)

    def kernel(a_ref, rhs_ref, a2_ref, r2_ref, l1_ref, l23_ref, out_ref,
               hp2_ref, hn2_ref):
        i = pl.program_id(0)           # m tile  (parallel)
        j = pl.program_id(1)           # n tile  (reduction)

        av = a_ref[...]                # (tm, dpad)
        rr = rhs_ref[...]              # (2*tn, dpad): [pos tile ; neg tile]

        # One MXU matmul, contracting the minor dims directly (no transpose).
        dots = jax.lax.dot_general(
            av, rr, dimension_numbers=(((1,), (1,)), ((), ())),
            preferred_element_type=jnp.float32)              # (tm, 2*tn)

        a2v = a2_ref[...]              # (tm, 1)
        r2v = r2_ref[...]              # (2, 1, tn)
        d2_ap = a2v + r2v[0] - 2.0 * dots[:, :tn]            # squared dists
        d2_an = a2v + r2v[1] - 2.0 * dots[:, tn:]

        # Masks as single selects (no float-mask arithmetic); iota mask drops
        # the zero-padded columns.
        l1v = l1_ref[...]              # (tm, 1) int32
        l23v = l23_ref[...]            # (2, 1, tn) int32
        col = j * tn + jax.lax.broadcasted_iota(jnp.int32, (1, tn), 1)
        col_ok = col < n
        keep_p = col_ok & (l1v == l23v[0])    # same-label positives
        keep_n = col_ok & (l1v != l23v[1])    # different-label negatives

        tile_max = jnp.max(jnp.where(keep_p, d2_ap, -BIG), axis=1,
                           keepdims=True)                    # (tm, 1)
        tile_min = jnp.min(jnp.where(keep_n, d2_an, BIG), axis=1,
                           keepdims=True)                    # (tm, 1)

        @pl.when(j == 0)
        def _init():
            hp2_ref[...] = jnp.full_like(hp2_ref, -BIG)
            hn2_ref[...] = jnp.full_like(hn2_ref, BIG)

        hp2_ref[...] = jnp.maximum(hp2_ref[...], tile_max)
        hn2_ref[...] = jnp.minimum(hn2_ref[...], tile_min)

        @pl.when(j == pl.num_programs(1) - 1)
        def _finalize():
            hp2 = hp2_ref[...]
            hn2 = hn2_ref[...]
            # Deferred sqrt (monotone => identical hard pair).  Keep the -BIG
            # sentinel for rows with no valid positive so they hinge to 0,
            # matching the additive-mask PyTorch formulation.
            hard_p = jnp.where(hp2 < -1.0, hp2,
                               jnp.sqrt(jnp.maximum(hp2, 1e-12)))
            hard_n = jnp.sqrt(jnp.maximum(hn2, 1e-12))
            hinge = jnp.maximum(hard_p - hard_n + margin, 0.0)
            row = i * tm + jax.lax.broadcasted_iota(jnp.int32, (tm, 1), 0)
            out_ref[...] = jnp.where(row < m, hinge, 0.0)    # drop m padding

    hinge = pl.pallas_call(
        kernel,
        out_shape=jax.ShapeDtypeStruct((m_pad, 1), jnp.float32),
        grid_spec=pltpu.PrefetchScalarGridSpec(
            num_scalar_prefetch=0,
            grid=grid,
            in_specs=[
                pl.BlockSpec((tm, dpad), lambda i, j: (i, 0)),      # anchor
                pl.BlockSpec((2 * tn, dpad), lambda i, j: (j, 0)),  # pos|neg
                pl.BlockSpec((tm, 1), lambda i, j: (i, 0)),         # |a|^2
                pl.BlockSpec((2, 1, tn), lambda i, j: (0, 0, j)),   # |p|^2,|n|^2
                pl.BlockSpec((tm, 1), lambda i, j: (i, 0)),         # label1
                pl.BlockSpec((2, 1, tn), lambda i, j: (0, 0, j)),   # label2/3
            ],
            out_specs=pl.BlockSpec((tm, 1), lambda i, j: (i, 0)),
            scratch_shapes=[pltpu.VMEM((tm, 1), jnp.float32),
                            pltpu.VMEM((tm, 1), jnp.float32)],
        ),
        compiler_params=pltpu.CompilerParams(
            dimension_semantics=("parallel", "arbitrary")),
    )(a, rhs, a2, r2, l1, l23)

    # MarginRankingLoss reduction: mean over the true (unpadded) m rows.
    return jnp.sum(hinge) / jnp.float32(m)


def _reference(anchor, pos, neg, label1, label2, label3, margin=MARGIN):
    """Pure-JAX mirror of the PyTorch module (additive-mask formulation)."""
    def pdist(e1, e2):
        d2 = (jnp.sum(e1 * e1, axis=1, keepdims=True)
              + jnp.sum(e2 * e2, axis=1, keepdims=True).T
              - 2.0 * jnp.dot(e1, e2.T, preferred_element_type=jnp.float32))
        return jnp.sqrt(jnp.clip(d2, 1e-12))

    sim_ap = (label1[:, None] == label2[None, :]).astype(jnp.float32)
    sim_an = (label1[:, None] == label3[None, :]).astype(jnp.float32)
    hard_p = jnp.max(pdist(anchor, pos) - BIG * (1.0 - sim_ap), axis=1)
    hard_n = jnp.min(pdist(anchor, neg) + BIG * sim_an, axis=1)
    return jnp.mean(jnp.maximum(hard_p - hard_n + margin, 0.0))


if __name__ == "__main__":
    key = jax.random.PRNGKey(0)
    m, n, dim = 48, 300, 72
    k1, k2, k3, k4, k5, k6 = jax.random.split(key, 6)
    anchor = jax.random.normal(k1, (m, dim), dtype=jnp.float32)
    pos = jax.random.normal(k2, (n, dim), dtype=jnp.float32)
    neg = jax.random.normal(k3, (n, dim), dtype=jnp.float32)
    label1 = jax.random.randint(k4, (m,), 0, 4, dtype=jnp.int32)
    label2 = jax.random.randint(k5, (n,), 0, 4, dtype=jnp.int32)
    label3 = jax.random.randint(k6, (n,), 0, 8, dtype=jnp.int32)

    # Small tiles so the tiny example still exercises a multi-tile grid
    # (2 parallel m-tiles x 3 n reduction steps, with m/n/dim padding).
    loss = cross_triplet_loss(anchor, pos, neg, label1, label2, label3,
                              tm=32, tn=128)
    jax.block_until_ready(loss)

    ref = _reference(anchor, pos, neg, label1, label2, label3)
    assert jnp.allclose(loss, ref, rtol=1e-3, atol=1e-3), (loss, ref)
    print("KERNEL_OK")
</pallas_src>

<mosaic_0001>
module attributes {stable_mosaic.version = 11 : i64} {
  func.func @kernel(%arg0: i32, %arg1: i32, %arg2: memref<32x128xf32, #tpu.memory_space<vmem>>, %arg3: memref<256x128xf32, #tpu.memory_space<vmem>>, %arg4: memref<32x1xf32, #tpu.memory_space<vmem>>, %arg5: memref<2x1x128xf32, #tpu.memory_space<vmem>>, %arg6: memref<32x1xi32, #tpu.memory_space<vmem>>, %arg7: memref<2x1x128xi32, #tpu.memory_space<vmem>>, %arg8: memref<32x1xf32, #tpu.memory_space<vmem>>, %arg9: memref<32x1xf32, #tpu.memory_space<vmem>>, %arg10: memref<32x1xf32, #tpu.memory_space<vmem>>) attributes {dimension_semantics = [#tpu.dimension_semantics<parallel>, #tpu.dimension_semantics<arbitrary>], iteration_bounds = array<i64: 2, 3>, scalar_prefetch = 0 : i64, scratch_operands = 2 : i64, tpu.core_type = #tpu.core_type<tc>, window_params = [{transform_indices = @transform_0, window_bounds = array<i64: 32, 128>}, {transform_indices = @transform_1, window_bounds = array<i64: 256, 128>}, {transform_indices = @transform_2, window_bounds = array<i64: 32, 1>}, {transform_indices = @transform_3, window_bounds = array<i64: 2, 1, 128>}, {transform_indices = @transform_4, window_bounds = array<i64: 32, 1>}, {transform_indices = @transform_5, window_bounds = array<i64: 2, 1, 128>}, {transform_indices = @transform_6, window_bounds = array<i64: 32, 1>}]} {
    %c0 = arith.constant 0 : index
    %c0_0 = arith.constant 0 : index
    %0 = vector.load %arg2[%c0, %c0_0] : memref<32x128xf32, #tpu.memory_space<vmem>>, vector<32x128xf32>
    %c0_1 = arith.constant 0 : index
    %c0_2 = arith.constant 0 : index
    %1 = vector.load %arg3[%c0_1, %c0_2] : memref<256x128xf32, #tpu.memory_space<vmem>>, vector<256x128xf32>
    %cst = arith.constant dense<0.000000e+00> : vector<32x256xf32>
    %2 = tpu.matmul %0, %1, %cst {dimension_numbers = #tpu.dot_dimension_numbers<[1], [1], [0], [0], [0, 0, 1, 0], [], []>} : vector<32x128xf32>, vector<256x128xf32>, vector<32x256xf32> -> vector<32x256xf32>
    %c0_3 = arith.constant 0 : index
    %c0_4 = arith.constant 0 : index
    %3 = vector.load %arg4[%c0_3, %c0_4] : memref<32x1xf32, #tpu.memory_space<vmem>>, vector<32x1xf32>
    %c0_5 = arith.constant 0 : index
    %c0_6 = arith.constant 0 : index
    %c0_7 = arith.constant 0 : index
    %4 = vector.load %arg5[%c0_5, %c0_6, %c0_7] : memref<2x1x128xf32, #tpu.memory_space<vmem>>, vector<2x1x128xf32>
    %5 = vector.extract_strided_slice %4 {offsets = [0, 0, 0], sizes = [1, 1, 128], strides = [1, 1, 1]} : vector<2x1x128xf32> to vector<1x1x128xf32>
    %6 = vector.shape_cast %5 : vector<1x1x128xf32> to vector<1x128xf32>
    %7 = vector.broadcast %3 : vector<32x1xf32> to vector<32x128xf32>
    %8 = vector.broadcast %6 : vector<1x128xf32> to vector<32x128xf32>
    %9 = arith.addf %7, %8 : vector<32x128xf32>
    %10 = vector.extract_strided_slice %2 {offsets = [0, 0], sizes = [32, 128], strides = [1, 1]} : vector<32x256xf32> to vector<32x128xf32>
    %cst_8 = arith.constant 2.000000e+00 : f32
    %11 = vector.broadcast %cst_8 : f32 to vector<32x128xf32>
    %12 = arith.mulf %11, %10 : vector<32x128xf32>
    %13 = arith.subf %9, %12 : vector<32x128xf32>
    %14 = vector.extract_strided_slice %4 {offsets = [1, 0, 0], sizes = [1, 1, 128], strides = [1, 1, 1]} : vector<2x1x128xf32> to vector<1x1x128xf32>
    %15 = vector.shape_cast %14 : vector<1x1x128xf32> to vector<1x128xf32>
    %16 = vector.broadcast %3 : vector<32x1xf32> to vector<32x128xf32>
    %17 = vector.broadcast %15 : vector<1x128xf32> to vector<32x128xf32>
    %18 = arith.addf %16, %17 : vector<32x128xf32>
    %19 = vector.extract_strided_slice %2 {offsets = [0, 128], sizes = [32, 128], strides = [1, 1]} : vector<32x256xf32> to vector<32x128xf32>
    %cst_9 = arith.constant 2.000000e+00 : f32
    %20 = vector.broadcast %cst_9 : f32 to vector<32x128xf32>
    %21 = arith.mulf %20, %19 : vector<32x128xf32>
    %22 = arith.subf %18, %21 : vector<32x128xf32>
    %c0_10 = arith.constant 0 : index
    %c0_11 = arith.constant 0 : index
    %23 = vector.load %arg6[%c0_10, %c0_11] : memref<32x1xi32, #tpu.memory_space<vmem>>, vector<32x1xi32>
    %c0_12 = arith.constant 0 : index
    %c0_13 = arith.constant 0 : index
    %c0_14 = arith.constant 0 : index
    %24 = vector.load %arg7[%c0_12, %c0_13, %c0_14] : memref<2x1x128xi32, #tpu.memory_space<vmem>>, vector<2x1x128xi32>
    %c128_i32 = arith.constant 128 : i32
    %25 = arith.muli %arg1, %c128_i32 : i32
    %26 = tpu.iota {dimensions = array<i32: 1>} : vector<1x128xi32>
    %27 = vector.broadcast %25 : i32 to vector<1x128xi32>
    %28 = arith.addi %27, %26 : vector<1x128xi32>
    %c300_i32 = arith.constant 300 : i32
    %29 = vector.broadcast %c300_i32 : i32 to vector<1x128xi32>
    %30 = arith.cmpi slt, %28, %29 : vector<1x128xi32>
    %31 = vector.extract_strided_slice %24 {offsets = [0, 0, 0], sizes = [1, 1, 128], strides = [1, 1, 1]} : vector<2x1x128xi32> to vector<1x1x128xi32>
    %32 = vector.shape_cast %31 : vector<1x1x128xi32> to vector<1x128xi32>
    %33 = vector.broadcast %23 : vector<32x1xi32> to vector<32x128xi32>
    %34 = vector.broadcast %32 : vector<1x128xi32> to vector<32x128xi32>
    %35 = arith.cmpi eq, %33, %34 : vector<32x128xi32>
    %36 = vector.broadcast %30 : vector<1x128xi1> to vector<32x128xi1>
    %37 = arith.andi %36, %35 : vector<32x128xi1>
    %38 = vector.extract_strided_slice %24 {offsets = [1, 0, 0], sizes = [1, 1, 128], strides = [1, 1, 1]} : vector<2x1x128xi32> to vector<1x1x128xi32>
    %39 = vector.shape_cast %38 : vector<1x1x128xi32> to vector<1x128xi32>
    %40 = vector.broadcast %23 : vector<32x1xi32> to vector<32x128xi32>
    %41 = vector.broadcast %39 : vector<1x128xi32> to vector<32x128xi32>
    %42 = arith.cmpi ne, %40, %41 : vector<32x128xi32>
    %43 = vector.broadcast %30 : vector<1x128xi1> to vector<32x128xi1>
    %44 = arith.andi %43, %42 : vector<32x128xi1>
    %cst_15 = arith.constant 0xCB18967F : f32
    %45 = vector.broadcast %cst_15 : f32 to vector<32x128xf32>
    %46 = arith.select %37, %13, %45 : vector<32x128xi1>, vector<32x128xf32>
    %cst_16 = arith.constant dense<0xFF800000> : vector<32xf32>
    %47 = vector.multi_reduction <maximumf>, %46, %cst_16 [1] : vector<32x128xf32> to vector<32xf32>
    %48 = vector.shape_cast %47 : vector<32xf32> to vector<32x1xf32>
    %cst_17 = arith.constant 0x4B18967F : f32
    %49 = vector.broadcast %cst_17 : f32 to vector<32x128xf32>
    %50 = arith.select %44, %22, %49 : vector<32x128xi1>, vector<32x128xf32>
    %cst_18 = arith.constant dense<0x7F800000> : vector<32xf32>
    %51 = vector.multi_reduction <minimumf>, %50, %cst_18 [1] : vector<32x128xf32> to vector<32xf32>
    %52 = vector.shape_cast %51 : vector<32xf32> to vector<32x1xf32>
    %c0_i32 = arith.constant 0 : i32
    %53 = arith.cmpi eq, %arg1, %c0_i32 : i32
    %54 = arith.extui %53 : i1 to i32
    %c0_i32_19 = arith.constant 0 : i32
    %55 = arith.cmpi ne, %54, %c0_i32_19 : i32
    scf.if %55 {
      %cst_29 = arith.constant 0xCB18967F : f32
      %65 = vector.broadcast %cst_29 : f32 to vector<32x1xf32>
      %c0_30 = arith.constant 0 : index
      %c0_31 = arith.constant 0 : index
      %66 = vector.load %arg9[%c0_30, %c0_31] : memref<32x1xf32, #tpu.memory_space<vmem>>, vector<32x1xf32>
      tpu.vector_store %arg9[%c0_30, %c0_31], %65 {strides = array<i32>} : memref<32x1xf32, #tpu.memory_space<vmem>>, vector<32x1xf32>,
      %cst_32 = arith.constant 0x4B18967F : f32
      %67 = vector.broadcast %cst_32 : f32 to vector<32x1xf32>
      %c0_33 = arith.constant 0 : index
      %c0_34 = arith.constant 0 : index
      %68 = vector.load %arg10[%c0_33, %c0_34] : memref<32x1xf32, #tpu.memory_space<vmem>>, vector<32x1xf32>
      tpu.vector_store %arg10[%c0_33, %c0_34], %67 {strides = array<i32>} : memref<32x1xf32, #tpu.memory_space<vmem>>, vector<32x1xf32>,
    } else {
    }
    %c0_20 = arith.constant 0 : index
    %c0_21 = arith.constant 0 : index
    %56 = vector.load %arg9[%c0_20, %c0_21] : memref<32x1xf32, #tpu.memory_space<vmem>>, vector<32x1xf32>
    %57 = arith.maximumf %56, %48 : vector<32x1xf32>
    %c0_22 = arith.constant 0 : index
    %c0_23 = arith.constant 0 : index
    %58 = vector.load %arg9[%c0_22, %c0_23] : memref<32x1xf32, #tpu.memory_space<vmem>>, vector<32x1xf32>
    tpu.vector_store %arg9[%c0_22, %c0_23], %57 {strides = array<i32>} : memref<32x1xf32, #tpu.memory_space<vmem>>, vector<32x1xf32>,
    %c0_24 = arith.constant 0 : index
    %c0_25 = arith.constant 0 : index
    %59 = vector.load %arg10[%c0_24, %c0_25] : memref<32x1xf32, #tpu.memory_space<vmem>>, vector<32x1xf32>
    %60 = arith.minimumf %59, %52 : vector<32x1xf32>
    %c0_26 = arith.constant 0 : index
    %c0_27 = arith.constant 0 : index
    %61 = vector.load %arg10[%c0_26, %c0_27] : memref<32x1xf32, #tpu.memory_space<vmem>>, vector<32x1xf32>
    tpu.vector_store %arg10[%c0_26, %c0_27], %60 {strides = array<i32>} : memref<32x1xf32, #tpu.memory_space<vmem>>, vector<32x1xf32>,
    %c2_i32 = arith.constant 2 : i32
    %62 = arith.cmpi eq, %arg1, %c2_i32 : i32
    %63 = arith.extui %62 : i1 to i32
    %c0_i32_28 = arith.constant 0 : i32
    %64 = arith.cmpi ne, %63, %c0_i32_28 : i32
    scf.if %64 {
      %c0_29 = arith.constant 0 : index
      %c0_30 = arith.constant 0 : index
      %65 = vector.load %arg9[%c0_29, %c0_30] : memref<32x1xf32, #tpu.memory_space<vmem>>, vector<32x1xf32>
      %c0_31 = arith.constant 0 : index
      %c0_32 = arith.constant 0 : index
      %66 = vector.load %arg10[%c0_31, %c0_32] : memref<32x1xf32, #tpu.memory_space<vmem>>, vector<32x1xf32>
      %cst_33 = arith.constant -1.000000e+00 : f32
      %67 = vector.broadcast %cst_33 : f32 to vector<32x1xf32>
      %68 = arith.cmpf olt, %65, %67 : vector<32x1xf32>
      %cst_34 = arith.constant 9.99999996E-13 : f32
      %69 = vector.broadcast %cst_34 : f32 to vector<32x1xf32>
      %70 = arith.maximumf %65, %69 : vector<32x1xf32>
      %71 = math.sqrt %70 : vector<32x1xf32>
      %72 = arith.select %68, %65, %71 : vector<32x1xi1>, vector<32x1xf32>
      %cst_35 = arith.constant 9.99999996E-13 : f32
      %73 = vector.broadcast %cst_35 : f32 to vector<32x1xf32>
      %74 = arith.maximumf %66, %73 : vector<32x1xf32>
      %75 = math.sqrt %74 : vector<32x1xf32>
      %76 = arith.subf %72, %75 : vector<32x1xf32>
      %cst_36 = arith.constant 3.000000e-01 : f32
      %77 = vector.broadcast %cst_36 : f32 to vector<32x1xf32>
      %78 = arith.addf %76, %77 : vector<32x1xf32>
      %cst_37 = arith.constant 0.000000e+00 : f32
      %79 = vector.broadcast %cst_37 : f32 to vector<32x1xf32>
      %80 = arith.maximumf %78, %79 : vector<32x1xf32>
      %c32_i32 = arith.constant 32 : i32
      %81 = arith.muli %arg0, %c32_i32 : i32
      %82 = tpu.iota {dimensions = array<i32: 0>} : vector<32x1xi32>
      %83 = vector.broadcast %81 : i32 to vector<32x1xi32>
      %84 = arith.addi %83, %82 : vector<32x1xi32>
      %c48_i32 = arith.constant 48 : i32
      %85 = vector.broadcast %c48_i32 : i32 to vector<32x1xi32>
      %86 = arith.cmpi slt, %84, %85 : vector<32x1xi32>
      %cst_38 = arith.constant 0.000000e+00 : f32
      %87 = vector.broadcast %cst_38 : f32 to vector<32x1xf32>
      %88 = arith.select %86, %80, %87 : vector<32x1xi1>, vector<32x1xf32>
      %c0_39 = arith.constant 0 : index
      %c0_40 = arith.constant 0 : index
      %89 = vector.load %arg8[%c0_39, %c0_40] : memref<32x1xf32, #tpu.memory_space<vmem>>, vector<32x1xf32>
      tpu.vector_store %arg8[%c0_39, %c0_40], %88 {strides = array<i32>} : memref<32x1xf32, #tpu.memory_space<vmem>>, vector<32x1xf32>,
    } else {
    }
    return
  }
  func.func @transform_0(%arg0: i32, %arg1: i32) -> (i32, i32) {
    %c0_i32 = arith.constant 0 : i32
    %c0_i32_0 = arith.constant 0 : i32
    return %arg0, %c0_i32 : i32, i32
  }
  func.func @transform_1(%arg0: i32, %arg1: i32) -> (i32, i32) {
    %c0_i32 = arith.constant 0 : i32
    %c0_i32_0 = arith.constant 0 : i32
    return %arg1, %c0_i32 : i32, i32
  }
  func.func @transform_2(%arg0: i32, %arg1: i32) -> (i32, i32) {
    %c0_i32 = arith.constant 0 : i32
    %c0_i32_0 = arith.constant 0 : i32
    return %arg0, %c0_i32 : i32, i32
  }
  func.func @transform_3(%arg0: i32, %arg1: i32) -> (i32, i32, i32) {
    %c0_i32 = arith.constant 0 : i32
    %c0_i32_0 = arith.constant 0 : i32
    %c0_i32_1 = arith.constant 0 : i32
    return %c0_i32, %c0_i32_0, %arg1 : i32, i32, i32
  }
  func.func @transform_4(%arg0: i32, %arg1: i32) -> (i32, i32) {
    %c0_i32 = arith.constant 0 : i32
    %c0_i32_0 = arith.constant 0 : i32
    return %arg0, %c0_i32 : i32, i32
  }
  func.func @transform_5(%arg0: i32, %arg1: i32) -> (i32, i32, i32) {
    %c0_i32 = arith.constant 0 : i32
    %c0_i32_0 = arith.constant 0 : i32
    %c0_i32_1 = arith.constant 0 : i32
    return %c0_i32, %c0_i32_0, %arg1 : i32, i32, i32
  }
  func.func @transform_6(%arg0: i32, %arg1: i32) -> (i32, i32) {
    %c0_i32 = arith.constant 0 : i32
    %c0_i32_0 = arith.constant 0 : i32
    return %arg0, %c0_i32 : i32, i32
  }
}

</mosaic_0001>

<bundles_post_ra>
// kernel: tpu_custom_call.1
= control target key start
LH: loop header
LB: loop body
LE: loop exit
PB: predicated region body
PF: predicated region fallthrough
CT: control target
= control target key end

     0   :  { %11 = vsyncpa [#allocation5], 0  ;;  %s1796_s0 = inlined_call_operand.vmem [shape: f32[64,128], index: 0, kind: input, shape index: {}]   ;;  %s1797_s1 = inlined_call_operand.hbm [shape: f32[768,128], index: 1, kind: input, shape index: {}]   ;;  %s1798_s2 = inlined_call_operand.vmem [shape: f32[64,1], index: 2, kind: input, shape index: {}]   ;;  %s1799_s3 = inlined_call_operand.vmem [shape: f32[2,1,384], index: 3, kind: input, shape index: {}]   ;;  %s1800_s4 = inlined_call_operand.vmem [shape: s32[64,1], index: 4, kind: input, shape index: {}]   ;;  %s1801_s5 = inlined_call_operand.vmem [shape: s32[2,1,384], index: 5, kind: input, shape index: {}]   ;;  %s1802_s6 = inlined_call_operand.vmem [shape: f32[64,1], index: 6, kind: output, shape index: {}]  }
   0x1   :  { %13 = vsyncpa [#allocation5 + $0x1], 0  ;;  %s1377_s21 = smov 0   ;;  %s1379_s22 = smov 0  }
   0x2   :  { %s1381_s23 = smov 0   ;;  %s1383_s24 = smov 0  }
   0x3   :  { %s1385_s25 = smov 0   ;;  %s1387_s26 = smov 0  }
   0x4   :  { %s1389_s27 = smov 0   ;;  %s1391_s28 = smov 0  }
   0x5 LB: > { %s1031_s29 = sadd.s32 4294967295, %s1334_s28   ;;  %s28_s30 = sadd.s32 1, %s1326_s26  ;;  %s1334_s28 = sphi %s1391_s28, %s19_s28   ;;  %s1330_s27 = sphi %s1389_s27, %s1818_s27   ;;  %s1326_s26 = sphi %s1387_s26, %s1817_s26   ;;  %s1322_s25 = sphi %s1385_s25, %s1816_s25   ;;  %s1318_s24 = sphi %s1383_s24, %s1815_s24   ;;  %s1314_s23 = sphi %s1381_s23, %s1814_s23   ;;  %s1310_s22 = sphi %s1379_s22, %s1813_s22   ;;  %s1306_s21 = sphi %s1377_s21, %s1812_s21  }
   0x6   : > { %p29_p0 = scmp.ge.s32.totalorder %s28_s30, 3  ;;  %s31_s7 = sadd.s32 1, %s1330_s27 }
   0x7   : > { %s64_s8 = sadd.s32 1, %s1314_s23  ;;  %p71_p1 = scmp.ne.s32.totalorder %s1314_s23, %s1310_s22 }
   0x8   : > { %s1820_s30 = smov (%p29_p0, %s28_s30), 0  ;;  %s1822_s7 = smov (!%p29_p0, %s31_s7), %s1330_s27 }
   0x9   : > { %s61_s9 = ssub.s32 %s1326_s26, %s1820_s30  ;;  %p72_p2 = scmp.eq.s32.totalorder %s1334_s28, 0 }
   0xa   : > { %p33_p3 = scmp.ge.s32.totalorder %s1822_s7, 2  ;;  %p62_p4 = scmp.eq.s32.totalorder %s61_s9, 0 }
   0xb   : > { %p1427_p5 = por %p72_p2, %p71_p1  ;;  %p77_p6 = scmp.ne.s32.totalorder %s1310_s22, %s1306_s21 }
   0xc   : > { %s1824_s7 = smov (%p33_p3, %s1822_s7), 0  ;;  %p78_p7 = scmp.eq.s32.totalorder %s1031_s29, 0 }
   0xd   : > { %s1435_s11 = scalar_select %p62_p4, %s1314_s23, %s64_s8  }
   0xe   : > { %p1437_p8 = por %p78_p7, %p77_p6  ;;  %p1034_p9 = scmp.ge.s32.totalorder %s1334_s28, 6 }
   0xf   : > { %s1443_s13 = sand.u32 (!%p1034_p9), 1, %s1314_s23   ;;  %s1062_s14 = sshll.u32 (!%p1034_p9), %s1326_s26, 12 }
  0x10   : > { %227 = sbr.rel (%p1034_p9) target bundleno = 56 (0x38), region = 16  ;;  %s1035_s15 = sshll.u32 (!%p1034_p9), %s1443_s13, 8 }
  0x11   : > { %s1450_s18 = scalar_lea.hbm (!%p1034_p9), %s1797_s1, %s1062_s14  ;;  %s244_s19 = scalar_lea.vmem (!%p1034_p9), [#allocation4], %s1035_s15 }
  0x12   : > { %s251_s20 = sshll.u32 (!%p1034_p9), %s244_s19, 4  ;;  %s241_s21 = scalar_lea.sflag (!%p1034_p9), [#allocation5], %s1443_s13  ;;  %s1452_s20 = int_to_ptr.vmem [resolvable:$true] %s251_s20 }
  0x13   : > { %s1240_s29 = scalar_lea.hbm (!%p1034_p9), %s1450_s18, 4096  ;;  %s1244_s16 = scalar_lea.hbm (!%p1034_p9), %s1797_s1, 12288 }
  0x14   : > { %p1241_p10 = scmp.ne.s32.totalorder (!%p1034_p9), %s1450_s18, %s1240_s29  ;;  %p1245_p13 = scmp.lt.u32.totalorder (!%p1034_p9), %s1450_s18, %s1797_s1 }
  0x15   : > { %p1246_p0 = scmp.lt.u32.totalorder (!%p1034_p9), %s1244_s16, %s1240_s29  ;;  %p1248_p2 = scmp.lt.u32.totalorder (!%p1034_p9), %s1240_s29, %s1450_s18 }
  0x16   : > { %p1242_p11 = pnand (!%p1034_p9), %p1241_p10, %p1427_p5 }
  0x17   : > { %p1247_p1 = por %p1246_p0, %p1245_p13 }
  0x18   : > { %p1243_p12 = pneg %p1242_p11 }
  0x19   : > { %p1249_p3 = por %p1248_p2, %p1247_p1 }
  0x1b   : > { %p1250_p4 = pnand %p1249_p3, %p1243_p12 }
  0x1d   : > { %1253 = shalt.err (!%p1250_p4)
}
  0x1e   : > { %s1254_s15 = scalar_lea.vmem %s1452_s20, 4096  ;;  %s1336_s19 = smov [#allocation4]  }
  0x1f   : > { %p1255_p6 = scmp.ne.s32.totalorder %s1452_s20, %s1254_s15  ;;  %s1258_s8 = sshll.u32 %s1336_s19, 4  ;;  %s1259_s8 = int_to_ptr.vmem [resolvable:$false] %s1258_s8 }
  0x20   : > { %s1260_s9 = scalar_lea.vmem %s1259_s8, 8192  ;;  %p1261_p10 = scmp.lt.s32.totalorder %s1452_s20, %s1259_s8 }
  0x21   : > { %p1256_p7 = pnand %p1255_p6, %p1427_p5  ;;  %p1262_p11 = scmp.lt.s32.totalorder %s1260_s9, %s1254_s15 }
  0x23   : > { %p1257_p9 = pneg %p1256_p7  ;;  %p1263_p13 = por %p1262_p11, %p1261_p10 }
  0x25   : > { %p1264_p0 = pnand %p1263_p13, %p1257_p9 }
  0x27   : > { %1267 = shalt.err (!%p1264_p0)
}
  0x28   : > { %s1337_s29 = smov 128   ;;  %s1338_s16 = smov 8  }
  0x29   : > { %1151 = dma.hbm_to_vmem [thread:$0]  (%p1427_p5), %s1450_s18, 4096, %s1452_s20, %s241_s21, %s1337_s29, %s1337_s29, %s1338_s16  }
  0x2a   : > { %269 = sbr.rel (!%p1427_p5) target bundleno = 49 (0x31), region = 32  ;;  %s1038_s14 = sshll.u32 (%p1427_p5), %s1443_s13, 1 }
  0x2b   : > { %s274_s19 = scalar_lea.vmem (%p1427_p5), %s1799_s3, %s1326_s26  ;;  %s273_s8 = scalar_lea.vmem (%p1427_p5), [#allocation6], %s1038_s14 }
  0x2c   : > { %v290_v0 = vld [vmem:[%s274_s19] sm:$0x1] (%p1427_p5)  ;;  %v292_v1 = vld [vmem:[%s274_s19 + $0x3] sm:$0x1] (%p1427_p5) }
  0x2d   : > { %291 = vst [vmem:[%s273_s8] sm:$0x1] (%p1427_p5), %v290_v0  ;;  %293 = vst [vmem:[%s273_s8 + $0x1] sm:$0x1] (%p1427_p5), %v292_v1 }
  0x31 PF: > { %321 = sbr.rel (!%p1427_p5) target bundleno = 56 (0x38), region = 70  ;;  %s1039_s18 = sshll.u32 (%p1427_p5), %s1443_s13, 1 }
  0x32   : > { %s326_s9 = scalar_lea.vmem (%p1427_p5), %s1801_s5, %s1326_s26  ;;  %s325_s29 = scalar_lea.vmem (%p1427_p5), [#allocation7], %s1039_s18 }
  0x33   : > { %v342_v2 = vld [vmem:[%s326_s9] sm:$0x1] (%p1427_p5)  ;;  %v344_v3 = vld [vmem:[%s326_s9 + $0x3] sm:$0x1] (%p1427_p5) }
  0x34   : > { %343 = vst [vmem:[%s325_s29] sm:$0x1] (%p1427_p5), %v342_v2  ;;  %345 = vst [vmem:[%s325_s29 + $0x1] sm:$0x1] (%p1427_p5), %v344_v3 }
  0x38 PF: > { %p1040_p12 = scmp.ge.s32.totalorder %s1334_s28, 1  ;;  %p363_p1 = scmp.lt.s32.totalorder %s1334_s28, 7 }
  0x3a   : > { %p364_p2 = pnand %p1040_p12, %p363_p1 }
  0x3b   : > { %s1495_s10 = sand.u32 (!%p364_p2), 1, %s1310_s22  }
  0x3c   : > { %367 = sbr.rel (%p364_p2) target bundleno = 557 (0x22d), region = 104  ;;  %s1041_s13 = sshll.u32 (!%p364_p2), %s1495_s10, 8 }
  0x3d   : > { %s370_s16 = scalar_lea.sflag (!%p364_p2), [#allocation5], %s1495_s10  ;;  %s1499_s14 = scalar_lea.vmem (!%p364_p2), [#allocation4], %s1041_s13 }
  0x43   : > { %1301 = dma.done.wait (%p1437_p8), %s370_s16, 4096  }
  0x44   : > { %1303 = vsyncadd (%p1437_p8), %s370_s16, 4294963200  ;;  %s1044_s17 = sshll.u32 %s1322_s25, 2  ;;  %v1339_v4 = vmov 0   ;;  %v484_v5 = vld [vmem:[%s1499_s14 + $0x80] sm:$0xff]  ;;  %v485_v6 = vld [vmem:[%s1499_s14 + $0x88] sm:$0xff]  ;;  %p1057_p8 = scmp.ne.s32.totalorder %s1318_s24, 0 }
  0x45   : > { %p440_p5 = scmp.lt.s32.totalorder %s1044_s17, 7  ;;  %1222 = vset.pattern.permute.xlu0 %v1339_v4  ;;  %1223 = vset.pattern.permute.xlu1 %v1339_v4  ;;  %v468_v7 = vld [vmem:[%s1499_s14] sm:$0xff]  ;;  %v1103_v8 = vpack.c.bf16 %v485_v6, %v484_v5  ;;  %v469_v9 = vld [vmem:[%s1499_s14 + $0x8] sm:$0xff]  ;;  %v486_v10 = vld [vmem:[%s1499_s14 + $0x90] sm:$0xff]  ;;  %v658_v4 = vlaneseq }
  0x46   : > { %v487_v11 = vld [vmem:[%s1499_s14 + $0x98] sm:$0xff]  ;;  %v1105_v12 = vpack.c.bf16 %v469_v9, %v468_v7  ;;  %v470_v14 = vld [vmem:[%s1499_s14 + $0x10] sm:$0xff]  ;;  %v488_v16 = vld [vmem:[%s1499_s14 + $0xa0] sm:$0xff] }
  0x47   : > { %s1826_s17 = smov (!%p440_p5, %s1044_s17), 7  ;;  %v1107_v13 = vpack.c.bf16 %v487_v11, %v486_v10  ;;  %1104 = vmatprep.subr.bf16.mxu0 %v1103_v8  ;;  %1135 = vmatprep.subr.bf16.mxu1 %v1103_v8  ;;  %v471_v15 = vld [vmem:[%s1499_s14 + $0x18] sm:$0xff]  ;;  %v489_v17 = vld [vmem:[%s1499_s14 + $0xa8] sm:$0xff]  ;;  %v472_v24 = vld [vmem:[%s1499_s14 + $0x20] sm:$0xff]  ;;  %v659_v7 = vand.u32 127, %v658_v4 }
  0x48   : > { %s1506_s15 = sshll.u32 %s1826_s17, 3  ;;  %1106 = vmatpush3.bf16.xpose.msra.mxu0 %v1105_v12  ;;  %1143 = vmatpush3.bf16.xpose.msra.mxu1 %v1105_v12  ;;  %v1109_v18 = vpack.c.bf16 %v471_v15, %v470_v14  ;;  %v1111_v19 = vpack.c.bf16 %v489_v17, %v488_v16  ;;  %v473_v25 = vld [vmem:[%s1499_s14 + $0x28] sm:$0xff]  ;;  %v490_v26 = vld [vmem:[%s1499_s14 + $0xb0] sm:$0xff]  ;;  %v491_v27 = vld [vmem:[%s1499_s14 + $0xb8] sm:$0xff] }
  0x49   : > { %s1512_s12 = scalar_lea.vmem %s1802_s6, %s1506_s15  ;;  %1108 = vmatprep.subr.bf16.mxu0 %v1107_v13  ;;  %1136 = vmatprep.subr.bf16.mxu1 %v1107_v13  ;;  %s1528_s21 = scalar_lea.vmem %s1796_s0, %s1506_s15  ;;  %v1113_v29 = vpack.c.bf16 %v473_v25, %v472_v24  ;;  %v1115_v31 = vpack.c.bf16 %v491_v27, %v490_v26  ;;  %v474_v34 = vld [vmem:[%s1499_s14 + $0x30] sm:$0xff]  ;;  %v475_v35 = vld [vmem:[%s1499_s14 + $0x38] sm:$0xff]  ;;  %v492_v36 = vld [vmem:[%s1499_s14 + $0xc0] sm:$0xff] }
  0x4a   : > { %s450_s13 = scalar_lea.vmem %s1798_s2, %s1506_s15  ;;  %v1535_v20 = vld [vmem:[%s1528_s21] sm:$0xff]  ;;  %v1539_v21 = vld [vmem:[%s1528_s21 + $0x10] sm:$0xff]  ;;  %s456_s19 = scalar_lea.vmem %s1800_s4, %s1506_s15  ;;  %v493_v37 = vld [vmem:[%s1499_s14 + $0xc8] sm:$0xff]  ;;  %v1117_v39 = vpack.c.bf16 %v475_v35, %v474_v34 }
  0x4b   : > { %1095 = vmatprep.mubr.f32.mxu0 %v1535_v20  ;;  %v589_v22 = vld [vmem:[%s450_s13] sm:$0xff]  ;;  %v591_v23 = vld [vmem:[%s450_s13 + $0x10] sm:$0xff]  ;;  %1099 = vmatprep.mubr.f32.mxu1 %v1539_v21  ;;  %v590_v28 = vld [vmem:[%s450_s13 + $0x8] sm:$0xff]  ;;  %v1119_v41 = vpack.c.bf16 %v493_v37, %v492_v36  ;;  %s1054_s15 = sshll.u32 %s1318_s24, 7 }
  0x4c   : > { %597 = vperm.xlu0 %1222, %v589_v22   ;;  %607 = vperm.xlu1 %1223, %v591_v23   ;;  %v592_v30 = vld [vmem:[%s450_s13 + $0x18] sm:$0xff]  ;;  %v651_v32 = vld [vmem:[%s456_s19] sm:$0xff]  ;;  %v652_v33 = vld [vmem:[%s456_s19 + $0x8] sm:$0xff]  ;;  %v660_v8 = vstv %s1054_s15 }
  0x4d   : > { %v653_v38 = vld [vmem:[%s456_s19 + $0x10] sm:$0xff]  ;;  %v654_v40 = vld [vmem:[%s456_s19 + $0x18] sm:$0xff]  ;;  %v476_v42 = vld [vmem:[%s1499_s14 + $0x40] sm:$0xff]  ;;  %v1581_v11 = vadd.s32 %v660_v8, %v659_v7 }
  0x4e   : > { %v477_v43 = vld [vmem:[%s1499_s14 + $0x48] sm:$0xff]  ;;  %v494_v44 = vld [vmem:[%s1499_s14 + $0xd0] sm:$0xff]  ;;  %v495_v45 = vld [vmem:[%s1499_s14 + $0xd8] sm:$0xff] }
  0x4f   : > { %v1121_v46 = vpack.c.bf16 %v477_v43, %v476_v42  ;;  %v1123_v47 = vpack.c.bf16 %v495_v45, %v494_v44  ;;  %v478_v48 = vld [vmem:[%s1499_s14 + $0x50] sm:$0xff]  ;;  %v479_v49 = vld [vmem:[%s1499_s14 + $0x58] sm:$0xff]  ;;  %v496_v50 = vld [vmem:[%s1499_s14 + $0xe0] sm:$0xff]  ;;  %vm662_vm1 = vcmp.lt.s32.totalorder %v1581_v11, 300 }
  0x50   : > { %1110 = vmatpush3.bf16.xpose.msra.mxu0 %v1109_v18  ;;  %1144 = vmatpush3.bf16.xpose.msra.mxu1 %v1109_v18  ;;  %v497_v51 = vld [vmem:[%s1499_s14 + $0xe8] sm:$0xff]  ;;  %v1125_v52 = vpack.c.bf16 %v479_v49, %v478_v48  ;;  %v480_v54 = vld [vmem:[%s1499_s14 + $0x60] sm:$0xff]  ;;  %v498_v56 = vld [vmem:[%s1499_s14 + $0xf0] sm:$0xff] }
  0x51   : > { %1112 = vmatprep.subr.bf16.mxu0 %v1111_v19  ;;  %1137 = vmatprep.subr.bf16.mxu1 %v1111_v19  ;;  %v1127_v53 = vpack.c.bf16 %v497_v51, %v496_v50  ;;  %v481_v55 = vld [vmem:[%s1499_s14 + $0x68] sm:$0xff]  ;;  %v499_v57 = vld [vmem:[%s1499_s14 + $0xf8] sm:$0xff]  ;;  %v482_v60 = vld [vmem:[%s1499_s14 + $0x70] sm:$0xff] }
  0x52   : > { %602 = vperm.xlu0 %1222, %v590_v28   ;;  %612 = vperm.xlu1 %1223, %v592_v30   ;;  %v1129_v58 = vpack.c.bf16 %v481_v55, %v480_v54  ;;  %v1131_v59 = vpack.c.bf16 %v499_v57, %v498_v56  ;;  %v483_v61 = vld [vmem:[%s1499_s14 + $0x78] sm:$0xff]  ;;  %v465_v63 = vld [vmem:[%s1528_s21 + $0x8] sm:$0xff]  ;;  %s1042_s14 = sshll.u32 %s1495_s10, 1 }
  0x53   : > { %v1133_v62 = vpack.c.bf16 %v483_v61, %v482_v60  ;;  %v467_v0 = vld [vmem:[%s1528_s21 + $0x18] sm:$0xff]  ;;  %s381_s8 = scalar_lea.vmem [#allocation6], %s1042_s14  ;;  %s388_s18 = scalar_lea.vmem [#allocation7], %s1042_s14 }
  0x54   : > { %v1052_v9 = vld [vmem:[%s381_s8] ss:$0 sm:$0xff]  ;;  %v1055_v12 = vld [vmem:[%s388_s18] ss:$0 sm:$0xff]  ;;  %v1053_v13 = vld [vmem:[%s381_s8 + $0x1] ss:$0 sm:$0xff] }
  0x55   : > { %v1583_v14 = vld [vmem:[%s388_s18 + $0x1] ss:$0 sm:$0xff] }
  0x56   : > { %664 = vperm.xlu0 %1222, %v651_v32   ;;  %667 = vperm.xlu1 %1223, %v652_v33  }
  0x58   : > { %1114 = vmatpush3.bf16.xpose.msra.mxu0 %v1113_v29  ;;  %1145 = vmatpush3.bf16.xpose.msra.mxu1 %v1113_v29 }
  0x59   : > { %1116 = vmatprep.subr.bf16.mxu0 %v1115_v31  ;;  %1138 = vmatprep.subr.bf16.mxu1 %v1115_v31 }
  0x5a   : > { %670 = vperm.xlu0 %1222, %v653_v38   ;;  %673 = vperm.xlu1 %1223, %v654_v40  }
  0x60   : > { %1118 = vmatpush3.bf16.xpose.msra.mxu0 %v1117_v39  ;;  %1146 = vmatpush3.bf16.xpose.msra.mxu1 %v1117_v39 }
  0x61   : > { %1120 = vmatprep.subr.bf16.mxu0 %v1119_v41  ;;  %1139 = vmatprep.subr.bf16.mxu1 %v1119_v41 }
  0x68   : > { %1122 = vmatpush3.bf16.xpose.msra.mxu0 %v1121_v46  ;;  %1147 = vmatpush3.bf16.xpose.msra.mxu1 %v1121_v46 }
  0x69   : > { %1124 = vmatprep.subr.bf16.mxu0 %v1123_v47  ;;  %1140 = vmatprep.subr.bf16.mxu1 %v1123_v47 }
  0x70   : > { %1126 = vmatpush3.bf16.xpose.msra.mxu0 %v1125_v52  ;;  %1148 = vmatpush3.bf16.xpose.msra.mxu1 %v1125_v52 }
  0x71   : > { %1128 = vmatprep.subr.bf16.mxu0 %v1127_v53  ;;  %1141 = vmatprep.subr.bf16.mxu1 %v1127_v53 }
  0x78   : > { %1130 = vmatpush3.bf16.xpose.msra.mxu0 %v1129_v58  ;;  %1149 = vmatpush3.bf16.xpose.msra.mxu1 %v1129_v58 }
  0x79   : > { %1132 = vmatprep.subr.bf16.mxu0 %v1131_v59  ;;  %1142 = vmatprep.subr.bf16.mxu1 %v1131_v59 }
  0x80   : > { %1134 = vmatpush3.bf16.xpose.msra.mxu0 %v1133_v62  ;;  %1150 = vmatpush3.bf16.xpose.msra.mxu1 %v1133_v62 }
  0x87   : > { %1096 = vmatmul.mubr.f32.vlgmr.msra.gmra.mrb[0].mxu0 %v1535_v20  ;;  %1100 = vmatmul.mubr.f32.vlgmr.msra.gmra.mrb[0].mxu1 %v1539_v21 }
  0x88   : > { %1097 = vmatprep.mubr.f32.mxu0 %v465_v63  ;;  %1101 = vmatprep.mubr.f32.mxu1 %v467_v0 }
  0x8b   : > { %1098 = vmatmul.mubr.f32.gmra.mrb[2].mxu0 %v465_v63  ;;  %1102 = vmatmul.mubr.f32.gmra.mrb[2].mxu1 %v467_v0 }
  0xcb   : > { %v598_v1 = vpop.permute.xlu0 %597  ;;  %v608_v2 = vpop.permute.xlu1 %607 }
  0xcc   : > { %v621_v16 = vadd.f32 %v1052_v9, %v598_v1  ;;  %v639_v23 = vadd.f32 %v1053_v13, %v598_v1  ;;  %v623_v25 = vadd.f32 %v1052_v9, %v608_v2  ;;  %v641_v42 = vadd.f32 %v1053_v13, %v608_v2 }
  0xcd   : > { %v1340_v1 = vmov (!%p1057_p8), -9999999.0   ;;  %v1341_v2 = vmov (!%p1057_p8), 9999999.0  }
  0xd1   : > { %v1572_v3 = vpop.permute.xlu0 %602  ;;  %v1575_v5 = vpop.permute.xlu1 %612 }
  0xd2   : > { %v622_v28 = vadd.f32 %v1052_v9, %v1572_v3  ;;  %v624_v40 = vadd.f32 %v1052_v9, %v1575_v5  ;;  %v640_v48 = vadd.f32 %v1053_v13, %v1572_v3  ;;  %v642_v53 = vadd.f32 %v1053_v13, %v1575_v5 }
  0xd5   : > { %v665_v6 = vpop.permute.xlu0 %664  ;;  %v1579_v10 = vpop.permute.xlu1 %667 }
  0xd6   : > { %vm679_vm0 = vcmp.eq.s32.totalorder %v665_v6, %v1055_v12  ;;  %vm693_vm2 = vcmp.ne.s32.totalorder %v665_v6, %v1583_v14  ;;  %vm680_vm3 = vcmp.eq.s32.totalorder %v1579_v10, %v1055_v12  ;;  %vm694_vm12 = vcmp.ne.s32.totalorder %v1579_v10, %v1583_v14 }
  0xd7   : > { %vm685_vm5 = vmand %vm662_vm1, %vm679_vm0 }
  0xd8   : > { %vm697_vm6 = vmand %vm662_vm1, %vm693_vm2  ;;  %vm729_vm2 = vcmask (!%p1057_p8), 7168  }
  0xd9   : > { %v671_v15 = vpop.permute.xlu0 %670  ;;  %v674_v26 = vpop.permute.xlu1 %673  ;;  %vm686_vm7 = vmand %vm662_vm1, %vm680_vm3  ;;  %730 = vst.msk [vmem:[#allocation2] sm:$0xff] (!%p1057_p8), %vm729_vm2, %v1340_v1 }
  0xda   : > { %vm681_vm4 = vcmp.eq.s32.totalorder %v671_v15, %v1055_v12  ;;  %vm682_vm8 = vcmp.eq.s32.totalorder %v674_v26, %v1055_v12  ;;  %vm695_vm10 = vcmp.ne.s32.totalorder %v671_v15, %v1583_v14  ;;  %vm698_vm14 = vmand %vm662_vm1, %vm694_vm12  ;;  %vm696_vm15 = vcmp.ne.s32.totalorder %v674_v26, %v1583_v14  ;;  %731 = vst.msk [vmem:[#allocation2 + $0x8] sm:$0xff] (!%p1057_p8), %vm729_vm2, %v1340_v1 }
  0xdb   : > { %vm687_vm9 = vmand %vm662_vm1, %vm681_vm4  ;;  %732 = vst.msk [vmem:[#allocation2 + $0x10] sm:$0xff] (!%p1057_p8), %vm729_vm2, %v1340_v1 }
  0xdc   : > { %vm688_vm11 = vmand %vm662_vm1, %vm682_vm8  ;;  %733 = vst.msk [vmem:[#allocation2 + $0x18] sm:$0xff] (!%p1057_p8), %vm729_vm2, %v1340_v1 }
  0xdd   : > { %vm699_vm13 = vmand %vm662_vm1, %vm695_vm10  ;;  %734 = vst.msk [vmem:[#allocation3] sm:$0xff] (!%p1057_p8), %vm729_vm2, %v1341_v2 }
  0xde   : > { %vm700_vm0 = vmand %vm662_vm1, %vm696_vm15  ;;  %735 = vst.msk [vmem:[#allocation3 + $0x8] sm:$0xff] (!%p1057_p8), %vm729_vm2, %v1341_v2 }
  0xdf   : > { %736 = vst.msk [vmem:[#allocation3 + $0x10] sm:$0xff] (!%p1057_p8), %vm729_vm2, %v1341_v2  ;;  %737 = vst.msk [vmem:[#allocation3 + $0x18] sm:$0xff] (!%p1057_p8), %vm729_vm2, %v1341_v2 }
 0x15a   : > { %v566_v17 = vpop.f32.mrb[0].mxu0  ;;  %v578_v18 = vpop.f32.mrb[0].mxu1 }
 0x15b   : > { %v625_v19 = vmul.f32 2.0, %v566_v17  ;;  %v627_v20 = vmul.f32 2.0, %v578_v18  ;;  %v568_v21 = vpop.f32.mrb[1].mxu0  ;;  %v580_v22 = vpop.f32.mrb[1].mxu1 }
 0x15c   : > { %v643_v24 = vmul.f32 2.0, %v568_v21  ;;  %v645_v38 = vmul.f32 2.0, %v580_v22 }
 0x15d   : > { %v629_v27 = vsub.f32 %v621_v16, %v625_v19  ;;  %v631_v37 = vsub.f32 %v623_v25, %v627_v20 }
 0x15e   : > { %v572_v29 = vpop.f32.mrb[2].mxu0  ;;  %v584_v30 = vpop.f32.mrb[2].mxu1  ;;  %v647_v31 = vsub.f32 %v639_v23, %v643_v24  ;;  %v649_v47 = vsub.f32 %v641_v42, %v645_v38 }
 0x15f   : > { %v626_v32 = vmul.f32 2.0, %v572_v29  ;;  %v628_v33 = vmul.f32 2.0, %v584_v30  ;;  %v574_v34 = vpop.f32.mrb[3].mxu0  ;;  %v586_v35 = vpop.f32.mrb[3].mxu1  ;;  %v701_v36 = vsel %vm685_vm5, %v629_v27, -9999999.0 }
 0x160   : > { %705 = vmax.xlane.f32.xlu0 %v701_v36  ;;  %v713_v39 = vsel %vm697_vm6, %v647_v31, 9999999.0  ;;  %v644_v43 = vmul.f32 2.0, %v574_v34  ;;  %v703_v44 = vsel %vm687_vm9, %v631_v37, -9999999.0  ;;  %v646_v50 = vmul.f32 2.0, %v586_v35 }
 0x161   : > { %717 = vmin.xlane.f32.xlu1 %v713_v39  ;;  %v630_v41 = vsub.f32 %v622_v28, %v626_v32  ;;  %v632_v46 = vsub.f32 %v624_v40, %v628_v33  ;;  %v715_v52 = vsel %vm699_vm13, %v649_v47, 9999999.0 }
 0x162   : > { %v648_v49 = vsub.f32 %v640_v48, %v644_v43  ;;  %v650_v54 = vsub.f32 %v642_v53, %v646_v50 }
 0x163   : > { %v702_v45 = vsel %vm686_vm7, %v630_v41, -9999999.0  ;;  %v704_v51 = vsel %vm688_vm11, %v632_v46, -9999999.0 }
 0x164   : > { %709 = vmax.xlane.f32.xlu0 %v703_v44  ;;  %v714_v55 = vsel %vm698_vm14, %v648_v49, 9999999.0  ;;  %v716_v56 = vsel %vm700_vm0, %v650_v54, 9999999.0 }
 0x165   : > { %707 = vmax.xlane.f32.xlu1 %v702_v45 }
 0x168   : > { %711 = vmax.xlane.f32.xlu0 %v704_v51 }
 0x169   : > { %721 = vmin.xlane.f32.xlu1 %v715_v52 }
 0x16c   : > { %719 = vmin.xlane.f32.xlu0 %v714_v55 }
 0x170   : > { %723 = vmin.xlane.f32.xlu0 %v716_v56 }
 0x1ed   : > { %v706_v57 = vpop.xlane.xlu0 %705 }
 0x1ee   : > { %v718_v58 = vpop.xlane.xlu1 %717 }
 0x1f1   : > { %v710_v59 = vpop.xlane.xlu0 %709 }
 0x1f2   : > { %v708_v60 = vpop.xlane.xlu1 %707 }
 0x1f5   : > { %v712_v61 = vpop.xlane.xlu0 %711 }
 0x1f6   : > { %v722_v62 = vpop.xlane.xlu1 %721 }
 0x1f7   : > { %728 = sbr.rel (%p1057_p8) target bundleno = 510 (0x1fe), region = 120 }
 0x1f9   : > { %v720_v63 = vpop.xlane.xlu0 %719 }
 0x1fd   : > { %v724_v0 = vpop.xlane.xlu0 %723 }
 0x1fe PF: > { %v738_v3 = vld [vmem:[#allocation2] sm:$0xff]  ;;  %vm1803_vm1 = vcmask 7168   ;;  %v739_v5 = vld [vmem:[#allocation2 + $0x8] sm:$0xff]  ;;  %v740_v6 = vld [vmem:[#allocation2 + $0x10] sm:$0xff]  ;;  %p1058_p3 = scmp.ne.s32.totalorder %s1318_s24, 2 }
 0x1ff   : > { %v742_v7 = vmax.f32 %v738_v3, %v706_v57  ;;  %v743_v8 = vmax.f32 %v739_v5, %v708_v60  ;;  %v744_v9 = vmax.f32 %v740_v6, %v710_v59  ;;  %v741_v10 = vld [vmem:[#allocation2 + $0x18] sm:$0xff]  ;;  %v751_v11 = vld [vmem:[#allocation3] sm:$0xff]  ;;  %v752_v12 = vld [vmem:[#allocation3 + $0x8] sm:$0xff]  ;;  %s1059_s10 = sshll.u32 (!%p1058_p3), %s1322_s25, 5  ;;  %v1643_v28 = vshrl.u32 (!%p1058_p3), %v658_v4, 7 }
 0x200   : > { %v745_v13 = vmax.f32 %v741_v10, %v712_v61  ;;  %v755_v14 = vmin.f32 %v751_v11, %v718_v58  ;;  %v756_v15 = vmin.f32 %v752_v12, %v720_v63  ;;  %v753_v16 = vld [vmem:[#allocation3 + $0x10] sm:$0xff]  ;;  %v754_v17 = vld [vmem:[#allocation3 + $0x18] sm:$0xff]  ;;  %766 = sbr.rel (%p1058_p3) target bundleno = 557 (0x22d), region = 124  ;;  %v1650_v32 = vstv (!%p1058_p3), %s1059_s10 }
 0x201   : > { %747 = vst.msk [vmem:[#allocation2] sm:$0xff] %vm1803_vm1, %v742_v7  ;;  %748 = vst.msk [vmem:[#allocation2 + $0x8] sm:$0xff] %vm1803_vm1, %v743_v8  ;;  %v757_v18 = vmin.f32 %v753_v16, %v722_v62  ;;  %v758_v19 = vmin.f32 %v754_v17, %v724_v0  ;;  %v862_v34 = vadd.s32 (!%p1058_p3), 8, %v1643_v28  ;;  %v1665_v36 = vadd.s32 (!%p1058_p3), %v1650_v32, %v1643_v28 }
 0x202   : > { %749 = vst.msk [vmem:[#allocation2 + $0x10] sm:$0xff] %vm1803_vm1, %v744_v9  ;;  %750 = vst.msk [vmem:[#allocation2 + $0x18] sm:$0xff] %vm1803_vm1, %v745_v13  ;;  %v863_v47 = vadd.s32 (!%p1058_p3), 16, %v1643_v28 }
 0x203   : > { %759 = vst.msk [vmem:[#allocation3] sm:$0xff] %vm1803_vm1, %v755_v14  ;;  %760 = vst.msk [vmem:[#allocation3 + $0x8] sm:$0xff] %vm1803_vm1, %v756_v15  ;;  %v1678_v41 = vadd.s32 (!%p1058_p3), %v1650_v32, %v862_v34  ;;  %v864_v14 = vadd.s32 (!%p1058_p3), 24, %v1643_v28 }
 0x204   : > { %761 = vst.msk [vmem:[#allocation3 + $0x10] sm:$0xff] %vm1803_vm1, %v757_v18  ;;  %762 = vst.msk [vmem:[#allocation3 + $0x18] sm:$0xff] %vm1803_vm1, %v758_v19  ;;  %v868_v61 = vadd.s32 (!%p1058_p3), %v1650_v32, %v863_v47 }
 0x205   : > { %vm871_vm1 = vcmp.lt.s32.totalorder (!%p1058_p3), %v1678_v41, 48 }
 0x208   : > { %v1628_v20 = vld [vmem:[#allocation2] sm:$0xff]  ;;  %v1630_v22 = vld [vmem:[#allocation2 + $0x8] sm:$0xff] }
 0x209   : > { %v779_v23 = vmax.f32 %v1628_v20, 1e-12  ;;  %v1636_v26 = vmax.f32 %v1630_v22, 1e-12  ;;  %v1645_v29 = vld [vmem:[#allocation2 + $0x10] sm:$0xff]  ;;  %v1648_v31 = vld [vmem:[#allocation2 + $0x18] sm:$0xff] }
 0x20a   : > { %v771_v21 = vld [vmem:[#allocation3] sm:$0xff]  ;;  %v772_v25 = vld [vmem:[#allocation3 + $0x8] sm:$0xff]  ;;  %v1654_v33 = vmax.f32 %v1645_v29, 1e-12  ;;  %vm775_vm3 = vcmp.lt.f32.partialorder %v1628_v20, -1.0  ;;  %vm776_vm5 = vcmp.lt.f32.partialorder %v1630_v22, -1.0 }
 0x20b   : > { %v1633_v24 = vmax.f32 %v771_v21, 1e-12  ;;  %v1638_v27 = vmax.f32 %v772_v25, 1e-12  ;;  %1224 = vrsqrt.f32 %v779_v23  ;;  %v773_v30 = vld [vmem:[#allocation3 + $0x10] sm:$0xff]  ;;  %vm785_vm4 = vcmp.eq.f32.partialorder %v779_v23, inf }
 0x20c   : > { %v1658_v4 = vmax.f32 %v773_v30, 1e-12  ;;  %v1661_v35 = vmax.f32 %v1648_v31, 1e-12  ;;  %v774_v37 = vld [vmem:[#allocation3 + $0x18] sm:$0xff]  ;;  %vm787_vm6 = vcmp.eq.f32.partialorder %v779_v23, 0.0 }
 0x20d   : > { %1226 = vrsqrt.f32 %v1633_v24  ;;  %v788_v38 = vand.u32 2147483648, %v779_v23  ;;  %vm821_vm7 = vcmp.eq.f32.partialorder %v1633_v24, inf  ;;  %vm823_vm8 = vcmp.eq.f32.partialorder %v1633_v24, 0.0 }
 0x20e   : > { %1228 = vrsqrt.f32 %v1636_v26  ;;  %v824_v39 = vand.u32 2147483648, %v1633_v24  ;;  %vm792_vm9 = vcmp.eq.f32.partialorder %v1636_v26, inf  ;;  %vm794_vm10 = vcmp.eq.f32.partialorder %v1636_v26, 0.0 }
 0x20f   : > { %1230 = vrsqrt.f32 %v1638_v27  ;;  %v795_v40 = vand.u32 2147483648, %v1636_v26  ;;  %v1680_v42 = vmax.f32 %v774_v37, 1e-12  ;;  %vm828_vm11 = vcmp.eq.f32.partialorder %v1638_v27, inf }
 0x210   : > { %1232 = vrsqrt.f32 %v1654_v33  ;;  %vm830_vm12 = vcmp.eq.f32.partialorder %v1638_v27, 0.0  ;;  %v831_v44 = vand.u32 2147483648, %v1638_v27  ;;  %vm799_vm15 = vcmp.eq.f32.partialorder %v1654_v33, inf }
 0x211   : > { %1234 = vrsqrt.f32 %v1658_v4  ;;  %vm801_vm0 = vcmp.eq.f32.partialorder %v1654_v33, 0.0  ;;  %v802_v50 = vand.u32 2147483648, %v1654_v33  ;;  %vm835_vm2 = vcmp.eq.f32.partialorder %v1658_v4, inf }
 0x212   : > { %1236 = vrsqrt.f32 %v1661_v35  ;;  %vm837_vm14 = vcmp.eq.f32.partialorder %v1658_v4, 0.0  ;;  %vm778_vm13 = vcmp.lt.f32.partialorder %v1648_v31, -1.0  ;;  %v838_v57 = vand.u32 2147483648, %v1658_v4 }
 0x213   : > { %1238 = vrsqrt.f32 %v1680_v42  ;;  %v809_v11 = vand.u32 2147483648, %v1661_v35 }
 0x215   : > { %v1225_v43 = vpop.eup %1224 }
 0x216   : > { %v784_v46 = vmul.f32 %v1225_v43, %v779_v23 }
 0x217   : > { %v1227_v45 = vpop.eup %1226 }
 0x218   : > { %v1229_v48 = vpop.eup %1228  ;;  %v820_v49 = vmul.f32 %v1227_v45, %v1633_v24  ;;  %v786_v52 = vsel %vm785_vm4, %v779_v23, %v784_v46  ;;  %vm808_vm4 = vcmp.eq.f32.partialorder %v1661_v35, 0.0  ;;  %v845_v23 = vand.u32 2147483648, %v1680_v42 }
 0x219   : > { %v1231_v51 = vpop.eup %1230  ;;  %v791_v53 = vmul.f32 %v1229_v48, %v1636_v26  ;;  %v789_v54 = vsel %vm787_vm6, %v788_v38, %v786_v52  ;;  %vm1806_vm6 = vcmp.lt.f32.partialorder %v1645_v29, -1.0 }
 0x21a   : > { %v822_v55 = vsel %vm821_vm7, %v1633_v24, %v820_v49  ;;  %v827_v56 = vmul.f32 %v1231_v51, %v1638_v27  ;;  %v811_v58 = vsel %vm775_vm3, %v1628_v20, %v789_v54  ;;  %v1233_v62 = vpop.eup %1232  ;;  %vm806_vm3 = vcmp.eq.f32.partialorder %v1661_v35, inf }
 0x21b   : > { %v825_v59 = vsel %vm823_vm8, %v824_v39, %v822_v55  ;;  %v793_v60 = vsel %vm792_vm9, %v1636_v26, %v791_v53  ;;  %v1235_v2 = vpop.eup %1234  ;;  %v798_v6 = vmul.f32 %v1233_v62, %v1654_v33  ;;  %vm1807_vm7 = vcmp.lt.s32.totalorder %v1665_v36, 48 }
 0x21c   : > { %v847_v63 = vsub.f32 %v811_v58, %v825_v59  ;;  %v796_v0 = vsel %vm794_vm10, %v795_v40, %v793_v60  ;;  %v829_v1 = vsel %vm828_vm11, %v1638_v27, %v827_v56  ;;  %v1237_v7 = vpop.eup %1236  ;;  %v834_v10 = vmul.f32 %v1235_v2, %v1658_v4 }
 0x21d   : > { %v812_v3 = vsel %vm776_vm5, %v1630_v22, %v796_v0  ;;  %v832_v5 = vsel %vm830_vm12, %v831_v44, %v829_v1  ;;  %v800_v12 = vsel %vm799_vm15, %v1654_v33, %v798_v6  ;;  %v805_v13 = vmul.f32 %v1237_v7, %v1661_v35  ;;  %v1239_v19 = vpop.eup %1238 }
 0x21e   : > { %v851_v8 = vadd.f32 0.3, %v847_v63  ;;  %v848_v9 = vsub.f32 %v812_v3, %v832_v5  ;;  %vm842_vm5 = vcmp.eq.f32.partialorder %v1680_v42, inf  ;;  %v803_v17 = vsel %vm801_vm0, %v802_v50, %v800_v12 }
 0x21f   : > { %v836_v18 = vsel %vm835_vm2, %v1658_v4, %v834_v10  ;;  %v813_v20 = vsel %vm1806_vm6, %v1645_v29, %v803_v17  ;;  %v807_v22 = vsel %vm806_vm3, %v1661_v35, %v805_v13  ;;  %vm1808_vm8 = vcmask 7168  }
 0x220   : > { %v855_v15 = vmax.f32 %v851_v8, 0.0  ;;  %v852_v16 = vadd.f32 0.3, %v848_v9  ;;  %v839_v21 = vsel %vm837_vm14, %v838_v57, %v836_v18  ;;  %v810_v27 = vsel %vm808_vm4, %v809_v11, %v807_v22  ;;  %vm1809_vm10 = vmmov %vm1808_vm8 }
 0x221   : > { %v849_v26 = vsub.f32 %v813_v20, %v839_v21  ;;  %v841_v28 = vmul.f32 %v1239_v19, %v1680_v42  ;;  %vm844_vm9 = vcmp.eq.f32.partialorder %v1680_v42, 0.0  ;;  %v814_v33 = vsel %vm778_vm13, %v1648_v31, %v810_v27 }
 0x222   : > { %v874_v24 = vsel %vm1807_vm7, %v855_v15, 0.0  ;;  %v856_v25 = vmax.f32 %v852_v16, 0.0  ;;  %vm872_vm11 = vcmp.lt.s32.totalorder %v868_v61, 48  ;;  %v869_v36 = vadd.s32 %v1650_v32, %v864_v14 }
 0x223   : > { %878 = vst.msk [vmem:[%s1512_s12] sm:$0xff] %vm1808_vm8, %v874_v24  ;;  %v853_v30 = vadd.f32 0.3, %v849_v26  ;;  %v843_v34 = vsel %vm842_vm5, %v1680_v42, %v841_v28 }
 0x224   : > { %v875_v29 = vsel %vm871_vm1, %v856_v25, 0.0  ;;  %v846_v35 = vsel %vm844_vm9, %v845_v23, %v843_v34  ;;  %vm1810_vm1 = vmmov %vm1808_vm8  ;;  %vm873_vm12 = vcmp.lt.s32.totalorder %v869_v36, 48 }
 0x225   : > { %879 = vst.msk [vmem:[%s1512_s12 + $0x8] sm:$0xff] %vm1809_vm10, %v875_v29  ;;  %v857_v4 = vmax.f32 %v853_v30, 0.0  ;;  %v850_v37 = vsub.f32 %v814_v33, %v846_v35  ;;  %vm1811_vm13 = vmmov %vm1810_vm1 }
 0x227   : > { %v876_v38 = vsel %vm872_vm11, %v857_v4, 0.0  ;;  %v854_v39 = vadd.f32 0.3, %v850_v37 }
 0x228   : > { %880 = vst.msk [vmem:[%s1512_s12 + $0x10] sm:$0xff] %vm1810_vm1, %v876_v38 }
 0x229   : > { %v858_v40 = vmax.f32 %v854_v39, 0.0 }
 0x22b   : > { %v877_v41 = vsel %vm873_vm12, %v858_v40, 0.0 }
 0x22c   : > { %881 = vst.msk [vmem:[%s1512_s12 + $0x18] sm:$0xff] %vm1811_vm13, %v877_v41 }
 0x22d PF: > { %s19_s28 = sadd.s32 1, %s1334_s28   ;;  %s1812_s21 = smov %s1310_s22 }
 0x22e   : > { %p16_p4 = scmp.ge.s32.totalorder %s19_s28, 8   ;;  %s1813_s22 = smov %s1314_s23 }
 0x22f   : > { %s1814_s23 = smov %s1435_s11  ;;  %s1815_s24 = smov %s1326_s26 }
 0x230   : > { %s1816_s25 = smov %s1330_s27  ;;  %s1817_s26 = smov %s1820_s30 }
 0x231   : > { %s1818_s27 = smov %s1824_s7  ;;  %18 = sbr.rel (!%p16_p4) target bundleno = 5 (0x5), region = 185 }
 0x238   :  { %904 = vsyncpa [#allocation5], 1 }
 0x239   :  { %906 = vsyncpa [#allocation5 + $0x1], 1 }

</bundles_post_ra>
